<compile_context>
chip_gen: v7x
topology: tpu7x:2x2x1
jax: 0.10.0
libtpu: 0.0.40
codegen_flags: <defaults>
</compile_context>

<pallas_src>
import functools

import jax
import jax.numpy as jnp
from jax.experimental import pallas as pl
from jax.experimental.pallas import tpu as pltpu

LANE = 128
SUBLANE = 8

_ACTIVATIONS = {
    "tanh": jnp.tanh,
    "relu": lambda z: jnp.maximum(z, 0.0),
    "softplus": jax.nn.softplus,
    "htanh": lambda z: jnp.clip(z, -1.0, 1.0),
}
_EUP_ACTS = ("tanh", "softplus")  # activations that use transcendentals


def _round_up(x, m):
    return ((x + m - 1) // m) * m


# --------------------------------------------------------------------------------------
# Kernel: whole MLP fused over one row tile (activations never touch HBM).
# --------------------------------------------------------------------------------------
def _mlp_kernel(x_ref, *refs, num_layers, first_in, activation, out_cols, packed_rows):
    """refs = (w1, b1, ..., wL, bL, o_ref).  Hidden layers apply `activation`; the last
    layer is purely linear.  Accumulation / bias-add / activation are f32."""
    w_refs = refs[0:2 * num_layers:2]
    b_refs = refs[1:2 * num_layers:2]
    o_ref = refs[2 * num_layers]
    act = _ACTIVATIONS[activation]

    x = x_ref[...]

    # ---- first layer: in_features == 2, so use VPU broadcast multiply-adds (no MXU pass)
    w0 = w_refs[0][...]
    b0 = b_refs[0][...]
    if first_in <= 4:
        z = x[:, 0:1].astype(jnp.float32) * w0[0:1, :].astype(jnp.float32)
        for k in range(1, first_in):
            z = z + x[:, k:k + 1].astype(jnp.float32) * w0[k:k + 1, :].astype(jnp.float32)
    else:
        z = jnp.dot(x.astype(w0.dtype), w0, preferred_element_type=jnp.float32)
    z = z + b0.astype(jnp.float32)
    if num_layers > 1:
        z = act(z)

    # ---- remaining layers on the MXU (bf16 inputs if weights are bf16, f32 accumulation)
    # NOTE: padded activation lanes may be non-zero (softplus); they are cancelled because
    # the padded ROWS of the next layer's weight are zero (see prepare_branch_params).
    for li in range(1, num_layers):
        w = w_refs[li][...]
        b = b_refs[li][...]
        z = jnp.dot(z.astype(w.dtype), w, preferred_element_type=jnp.float32)
        z = z + b.astype(jnp.float32)
        if li < num_layers - 1:
            z = act(z)

    # ---- writeback: drop padded lanes; optionally repack into a lane-dense 128-wide slab
    z = z[:, :out_cols]
    if packed_rows is not None:
        z = z.reshape(packed_rows, LANE)  # row-major == flatten of the true (tm, out_cols)
    o_ref[...] = z.astype(o_ref.dtype)


# --------------------------------------------------------------------------------------
# Parameter construction / preparation
# --------------------------------------------------------------------------------------
def init_branch_params(key, layer_sizes, dim, K, dtype=jnp.float32):
    """Replicates branch.__init__: sizes = [2] + layer_sizes + [dim*K],
    xavier_normal_ weights, zero biases.  Weights stored as (in, out) == torch weight.T."""
    sizes = [2] + list(layer_sizes) + [dim * K]
    params = []
    for i in range(1, len(sizes)):
        fan_in, fan_out = sizes[i - 1], sizes[i]
        key, sub = jax.random.split(key)
        std = (2.0 / (fan_in + fan_out)) ** 0.5
        w = std * jax.random.normal(sub, (fan_in, fan_out), dtype=dtype)
        b = jnp.zeros((fan_out,), dtype=dtype)
        params.append((w, b))
    return params


def prepare_branch_params(params, compute_dtype=jnp.float32):
    """Zero-pad every layer's output width to a multiple of 128 lanes and each layer's
    input width to the previous layer's padded output width.  Padded weight ROWS are
    zero, which is what makes lane padding safe for activations with f(0) != 0 (softplus).
    Biases become (1, out_pad) f32.  Use compute_dtype=jnp.bfloat16 for the MXU-native
    production configuration (accumulation stays f32 in the kernel)."""
    padded = []
    prev_out_pad = None
    for idx, (w, b) in enumerate(params):
        fan_in, fan_out = w.shape
        out_pad = _round_up(fan_out, LANE)
        in_pad = fan_in if idx == 0 else prev_out_pad
        wp = jnp.zeros((in_pad, out_pad), compute_dtype)
        wp = wp.at[:fan_in, :fan_out].set(w.astype(compute_dtype))
        bp = jnp.zeros((1, out_pad), jnp.float32)
        bp = bp.at[0, :fan_out].set(b.astype(jnp.float32))
        padded.append((wp, bp))
        prev_out_pad = out_pad
    return padded


# --------------------------------------------------------------------------------------
# Forward pass
# --------------------------------------------------------------------------------------
def branch_forward(padded_params, x_func, dim, K, *, activation="tanh",
                   row_tile=2048, out_dtype=jnp.float32, pack_output=True,
                   vmem_budget_bytes=48 * 1024 * 1024):
    """Matches branch.forward: hidden layers with `activation`, final linear,
    reshape to (-1, dim, K).  Single fused pallas_call with a parallel row grid."""
    n, first_in = x_func.shape
    num_layers = len(padded_params)
    dk = dim * K
    assert padded_params[-1][0].shape[1] >= dk

    # ---- row tiling -------------------------------------------------------------------
    n8 = _round_up(max(n, 1), SUBLANE)
    tm = min(_round_up(row_tile, SUBLANE), n8)
    # Keep >=2 grid steps when possible so both v7x TensorCores get work.
    if n8 > SUBLANE:
        tm = min(tm, _round_up((n8 + 1) // 2, SUBLANE))

    widest = max(w.shape[1] for w, _ in padded_params)
    param_bytes = sum(w.size * w.dtype.itemsize + b.size * b.dtype.itemsize
                      for w, b in padded_params)

    def _vmem_estimate(tm_):
        b = 2 * tm_ * first_in * jnp.dtype(x_func.dtype).itemsize     # input, dbl-buffered
        b += 2 * param_bytes                                          # resident weights x2
        b += 2 * tm_ * dk * jnp.dtype(out_dtype).itemsize             # output, dbl-buffered
        b += 3 * tm_ * widest * 4                                     # live f32 activations
        return b

    # Shrink the row tile if resident double-buffered weights + tiles would exceed budget
    # (keeps the same code safe under v7x's 64 MiB VMEM if layer_sizes is scaled up).
    while tm > SUBLANE and _vmem_estimate(tm) > vmem_budget_bytes:
        tm = _round_up(tm // 2, SUBLANE)

    n_pad = _round_up(n8, tm)
    grid = (n_pad // tm,)

    # ---- input: avoid the extra HBM pad pass when N already matches ---------------------
    if n_pad == n:
        x_p = x_func
    else:
        x_p = jnp.zeros((n_pad, first_in), x_func.dtype).at[:n, :].set(x_func)

    # ---- specs --------------------------------------------------------------------------
    flat_params = []
    in_specs = [pl.BlockSpec((tm, first_in), lambda i: (i, 0))]
    for w, b in padded_params:
        flat_params += [w, b]
        in_specs += [
            pl.BlockSpec(w.shape, lambda i: (0, 0)),   # weights resident across grid
            pl.BlockSpec(b.shape, lambda i: (0, 0)),   # biases pre-padded to (1, out_pad)
        ]

    # ---- cost estimate + compiler params -------------------------------------------------
    flops = 2 * n_pad * sum(w.shape[0] * w.shape[1] for w, _ in padded_params)
    transcendentals = (n_pad * sum(w.shape[1] for w, _ in padded_params[:-1])
                       if activation in _EUP_ACTS and num_layers > 1 else 0)
    bytes_accessed = (x_p.size * x_p.dtype.itemsize + param_bytes
                      + n_pad * dk * jnp.dtype(out_dtype).itemsize)
    cost = pl.CostEstimate(flops=flops, transcendentals=transcendentals,
                           bytes_accessed=bytes_accessed)

    cp_kwargs = dict(dimension_semantics=("parallel",))
    est = _vmem_estimate(tm)
    if est > 24 * 1024 * 1024:
        cp_kwargs["vmem_limit_bytes"] = int(min(int(est * 1.25), 64 * 1024 * 1024))
    compiler_params = pltpu.CompilerParams(**cp_kwargs)

    # ---- build & run ---------------------------------------------------------------------
    def _run(packed_rows):
        if packed_rows is None:
            out_shape = jax.ShapeDtypeStruct((n_pad, dk), out_dtype)
            out_spec = pl.BlockSpec((tm, dk), lambda i: (i, 0))
        else:
            out_shape = jax.ShapeDtypeStruct((n_pad * dk // LANE, LANE), out_dtype)
            out_spec = pl.BlockSpec((packed_rows, LANE), lambda i: (i, 0))
        kernel = functools.partial(
            _mlp_kernel, num_layers=num_layers, first_in=first_in,
            activation=activation, out_cols=dk, packed_rows=packed_rows)
        return pl.pallas_call(
            kernel,
            out_shape=out_shape,
            grid=grid,
            in_specs=in_specs,
            out_specs=out_spec,
            compiler_params=compiler_params,
            cost_estimate=cost,
        )(x_p, *flat_params)

    out_2d = None
    can_pack = (pack_output
                and (tm * dk) % (LANE * SUBLANE) == 0
                and (LANE % dk == 0 or dk % LANE == 0))
    if can_pack:
        try:
            packed = _run(tm * dk // LANE)          # lane-dense (n_pad*dk/128, 128) slab
            out_2d = packed.reshape(n_pad, dk)      # row-major identical -> free reshape
        except Exception:
            # In-kernel repack not supported by this Mosaic build; fall back to the
            # unpadded-width store (still writes only the necessary HBM bytes).
            out_2d = None
    if out_2d is None:
        out_2d = _run(None)

    if n_pad != n:
        out_2d = out_2d[:n]
    return out_2d.reshape(-1, dim, K)


# --------------------------------------------------------------------------------------
# Demo / correctness check
# --------------------------------------------------------------------------------------
if __name__ == "__main__":
    layer_sizes = [32, 32]
    dim, K = 4, 8
    activation = "tanh"

    key = jax.random.PRNGKey(0)
    key_params, key_x1, key_x2 = jax.random.split(key, 3)
    params = init_branch_params(key_params, layer_sizes, dim, K)

    def ref_forward(params, x):
        z = x
        for w, b in params[:-1]:
            z = jnp.tanh(z @ w + b)
        w, b = params[-1]
        return (z @ w + b).reshape(-1, dim, K)

    # -- check 1: tiny N, f32 weights -> tight numerical check of padding/tiling/store path
    N1 = 8
    x1 = jax.random.normal(key_x1, (N1, 2), dtype=jnp.float32)
    pp_f32 = prepare_branch_params(params, compute_dtype=jnp.float32)
    out1 = jax.block_until_ready(
        branch_forward(pp_f32, x1, dim, K, activation=activation))
    ref1 = ref_forward(params, x1)
    assert out1.shape == (N1, dim, K), out1.shape
    assert jnp.allclose(out1, ref1, atol=1e-5, rtol=1e-5)

    # -- check 2: larger N, bf16 weights + bf16 output (recommended production config),
    #             multi-step parallel grid + lane-dense packed output path.
    N2 = 256
    x2 = jax.random.normal(key_x2, (N2, 2), dtype=jnp.float32)
    pp_bf16 = prepare_branch_params(params, compute_dtype=jnp.bfloat16)
    out2 = jax.block_until_ready(
        branch_forward(pp_bf16, x2, dim, K, activation=activation,
                       out_dtype=jnp.bfloat16))
    ref2 = ref_forward(params, x2)
    assert out2.shape == (N2, dim, K), out2.shape
    # bf16 weights/activations vs f32 reference: expected precision difference, not a bug.
    assert jnp.allclose(out2.astype(jnp.float32), ref2, atol=5e-2, rtol=5e-2)

    print("KERNEL_OK")
</pallas_src>

<mosaic_0001>
module attributes {stable_mosaic.version = 11 : i64} {
  func.func @_mlp_kernel(%arg0: i32, %arg1: memref<8x2xf32, #tpu.memory_space<vmem>>, %arg2: memref<2x128xf32, #tpu.memory_space<vmem>>, %arg3: memref<1x128xf32, #tpu.memory_space<vmem>>, %arg4: memref<128x128xf32, #tpu.memory_space<vmem>>, %arg5: memref<1x128xf32, #tpu.memory_space<vmem>>, %arg6: memref<128x128xf32, #tpu.memory_space<vmem>>, %arg7: memref<1x128xf32, #tpu.memory_space<vmem>>, %arg8: memref<8x32xf32, #tpu.memory_space<vmem>>) attributes {dimension_semantics = [#tpu.dimension_semantics<parallel>], iteration_bounds = array<i64: 1>, scalar_prefetch = 0 : i64, scratch_operands = 0 : i64, tpu.core_type = #tpu.core_type<tc>, window_params = [{transform_indices = @transform_0, window_bounds = array<i64: 8, 2>}, {pipeline_mode = #tpu.pipeline_mode<synchronous>, transform_indices = @transform_1, window_bounds = array<i64: 2, 128>}, {pipeline_mode = #tpu.pipeline_mode<synchronous>, transform_indices = @transform_2, window_bounds = array<i64: 1, 128>}, {pipeline_mode = #tpu.pipeline_mode<synchronous>, transform_indices = @transform_3, window_bounds = array<i64: 128, 128>}, {pipeline_mode = #tpu.pipeline_mode<synchronous>, transform_indices = @transform_4, window_bounds = array<i64: 1, 128>}, {pipeline_mode = #tpu.pipeline_mode<synchronous>, transform_indices = @transform_5, window_bounds = array<i64: 128, 128>}, {pipeline_mode = #tpu.pipeline_mode<synchronous>, transform_indices = @transform_6, window_bounds = array<i64: 1, 128>}, {transform_indices = @transform_7, window_bounds = array<i64: 8, 32>}]} {
    %c0 = arith.constant 0 : index
    %c0_0 = arith.constant 0 : index
    %0 = vector.load %arg1[%c0, %c0_0] : memref<8x2xf32, #tpu.memory_space<vmem>>, vector<8x2xf32>
    %c0_1 = arith.constant 0 : index
    %c0_2 = arith.constant 0 : index
    %1 = vector.load %arg2[%c0_1, %c0_2] : memref<2x128xf32, #tpu.memory_space<vmem>>, vector<2x128xf32>
    %c0_3 = arith.constant 0 : index
    %c0_4 = arith.constant 0 : index
    %2 = vector.load %arg3[%c0_3, %c0_4] : memref<1x128xf32, #tpu.memory_space<vmem>>, vector<1x128xf32>
    %3 = vector.extract_strided_slice %0 {offsets = [0, 0], sizes = [8, 1], strides = [1, 1]} : vector<8x2xf32> to vector<8x1xf32>
    %4 = vector.extract_strided_slice %1 {offsets = [0, 0], sizes = [1, 128], strides = [1, 1]} : vector<2x128xf32> to vector<1x128xf32>
    %5 = vector.broadcast %3 : vector<8x1xf32> to vector<8x128xf32>
    %6 = vector.broadcast %4 : vector<1x128xf32> to vector<8x128xf32>
    %7 = arith.mulf %5, %6 : vector<8x128xf32>
    %8 = vector.extract_strided_slice %0 {offsets = [0, 1], sizes = [8, 1], strides = [1, 1]} : vector<8x2xf32> to vector<8x1xf32>
    %9 = vector.extract_strided_slice %1 {offsets = [1, 0], sizes = [1, 128], strides = [1, 1]} : vector<2x128xf32> to vector<1x128xf32>
    %10 = vector.broadcast %8 : vector<8x1xf32> to vector<8x128xf32>
    %11 = vector.broadcast %9 : vector<1x128xf32> to vector<8x128xf32>
    %12 = arith.mulf %10, %11 : vector<8x128xf32>
    %13 = arith.addf %7, %12 : vector<8x128xf32>
    %14 = vector.broadcast %2 : vector<1x128xf32> to vector<8x128xf32>
    %15 = arith.addf %13, %14 : vector<8x128xf32>
    %16 = math.tanh %15 : vector<8x128xf32>
    %c0_5 = arith.constant 0 : index
    %c0_6 = arith.constant 0 : index
    %17 = vector.load %arg4[%c0_5, %c0_6] : memref<128x128xf32, #tpu.memory_space<vmem>>, vector<128x128xf32>
    %c0_7 = arith.constant 0 : index
    %c0_8 = arith.constant 0 : index
    %18 = vector.load %arg5[%c0_7, %c0_8] : memref<1x128xf32, #tpu.memory_space<vmem>>, vector<1x128xf32>
    %cst = arith.constant dense<0.000000e+00> : vector<8x128xf32>
    %19 = tpu.matmul %16, %17, %cst {dimension_numbers = #tpu.dot_dimension_numbers<[1], [0], [0], [1], [0, 0, 1, 1], [], []>} : vector<8x128xf32>, vector<128x128xf32>, vector<8x128xf32> -> vector<8x128xf32>
    %20 = vector.broadcast %18 : vector<1x128xf32> to vector<8x128xf32>
    %21 = arith.addf %19, %20 : vector<8x128xf32>
    %22 = math.tanh %21 : vector<8x128xf32>
    %c0_9 = arith.constant 0 : index
    %c0_10 = arith.constant 0 : index
    %23 = vector.load %arg6[%c0_9, %c0_10] : memref<128x128xf32, #tpu.memory_space<vmem>>, vector<128x128xf32>
    %c0_11 = arith.constant 0 : index
    %c0_12 = arith.constant 0 : index
    %24 = vector.load %arg7[%c0_11, %c0_12] : memref<1x128xf32, #tpu.memory_space<vmem>>, vector<1x128xf32>
    %cst_13 = arith.constant dense<0.000000e+00> : vector<8x128xf32>
    %25 = tpu.matmul %22, %23, %cst_13 {dimension_numbers = #tpu.dot_dimension_numbers<[1], [0], [0], [1], [0, 0, 1, 1], [], []>} : vector<8x128xf32>, vector<128x128xf32>, vector<8x128xf32> -> vector<8x128xf32>
    %26 = vector.broadcast %24 : vector<1x128xf32> to vector<8x128xf32>
    %27 = arith.addf %25, %26 : vector<8x128xf32>
    %28 = vector.extract_strided_slice %27 {offsets = [0, 0], sizes = [8, 32], strides = [1, 1]} : vector<8x128xf32> to vector<8x32xf32>
    %c0_14 = arith.constant 0 : index
    %c0_15 = arith.constant 0 : index
    %29 = vector.load %arg8[%c0_14, %c0_15] : memref<8x32xf32, #tpu.memory_space<vmem>>, vector<8x32xf32>
    tpu.vector_store %arg8[%c0_14, %c0_15], %28 {strides = array<i32>} : memref<8x32xf32, #tpu.memory_space<vmem>>, vector<8x32xf32>,
    return
  }
  func.func @transform_0(%arg0: i32) -> (i32, i32) {
    %c0_i32 = arith.constant 0 : i32
    %c0_i32_0 = arith.constant 0 : i32
    return %arg0, %c0_i32 : i32, i32
  }
  func.func @transform_1(%arg0: i32) -> (i32, i32) {
    %c0_i32 = arith.constant 0 : i32
    %c0_i32_0 = arith.constant 0 : i32
    %c0_i32_1 = arith.constant 0 : i32
    return %c0_i32, %c0_i32_0 : i32, i32
  }
  func.func @transform_2(%arg0: i32) -> (i32, i32) {
    %c0_i32 = arith.constant 0 : i32
    %c0_i32_0 = arith.constant 0 : i32
    %c0_i32_1 = arith.constant 0 : i32
    return %c0_i32, %c0_i32_0 : i32, i32
  }
  func.func @transform_3(%arg0: i32) -> (i32, i32) {
    %c0_i32 = arith.constant 0 : i32
    %c0_i32_0 = arith.constant 0 : i32
    %c0_i32_1 = arith.constant 0 : i32
    return %c0_i32, %c0_i32_0 : i32, i32
  }
  func.func @transform_4(%arg0: i32) -> (i32, i32) {
    %c0_i32 = arith.constant 0 : i32
    %c0_i32_0 = arith.constant 0 : i32
    %c0_i32_1 = arith.constant 0 : i32
    return %c0_i32, %c0_i32_0 : i32, i32
  }
  func.func @transform_5(%arg0: i32) -> (i32, i32) {
    %c0_i32 = arith.constant 0 : i32
    %c0_i32_0 = arith.constant 0 : i32
    %c0_i32_1 = arith.constant 0 : i32
    return %c0_i32, %c0_i32_0 : i32, i32
  }
  func.func @transform_6(%arg0: i32) -> (i32, i32) {
    %c0_i32 = arith.constant 0 : i32
    %c0_i32_0 = arith.constant 0 : i32
    %c0_i32_1 = arith.constant 0 : i32
    return %c0_i32, %c0_i32_0 : i32, i32
  }
  func.func @transform_7(%arg0: i32) -> (i32, i32) {
    %c0_i32 = arith.constant 0 : i32
    %c0_i32_0 = arith.constant 0 : i32
    return %arg0, %c0_i32 : i32, i32
  }
}

</mosaic_0001>

<bundles_post_ra>
// kernel: tpu_custom_call.1
= control target key start
LH: loop header
LB: loop body
LE: loop exit
PB: predicated region body
PF: predicated region fallthrough
CT: control target
= control target key end

     0   :  { %12 = vsyncpa [#allocation3], 0  ;;  %s651_s0 = inlined_call_operand.vmem [shape: f32[8,2], index: 0, kind: input, shape index: {}]   ;;  %s652_s1 = inlined_call_operand.vmem [shape: f32[2,128], index: 1, kind: input, shape index: {}]   ;;  %s653_s2 = inlined_call_operand.vmem [shape: f32[1,128], index: 2, kind: input, shape index: {}]   ;;  %s654_s3 = inlined_call_operand.hbm [shape: f32[128,128], index: 3, kind: input, shape index: {}]   ;;  %s655_s4 = inlined_call_operand.vmem [shape: f32[1,128], index: 4, kind: input, shape index: {}]   ;;  %s656_s5 = inlined_call_operand.hbm [shape: f32[128,128], index: 5, kind: input, shape index: {}]   ;;  %s657_s6 = inlined_call_operand.vmem [shape: f32[1,128], index: 6, kind: input, shape index: {}]   ;;  %s658_s7 = inlined_call_operand.hbm [shape: f32[8,32], index: 7, kind: output, shape index: {}]  }
   0x1   :  { %13 = vsyncpa [#allocation6], 0 }
   0x2   :  { %14 = vsyncpa [#allocation4], 0  ;;  %s534_s24 = smov [#allocation2]   ;;  %s462_s28 = scalar_lea.hbm %s654_s3, 2048 }
   0x3   :  { %s26_s25 = sshll.u32 %s534_s24, 4  ;;  %p463_p0 = scmp.ne.s32.totalorder %s654_s3, %s462_s28  ;;  %s27_s25 = int_to_ptr.vmem [resolvable:$true] %s26_s25 }
   0x4   :  { %p466_p1 = scmp.lt.u32.totalorder %s462_s28, %s654_s3 }
   0x6   :  { %p468_p2 = pnand %p466_p1, %p463_p0 }
   0x8   :  { %471 = shalt.err (!%p468_p2)
}
   0x9   :  { %s472_s10 = scalar_lea.vmem %s27_s25, 2048  ;;  %p477_p4 = scmp.lt.s32.totalorder %s27_s25, %s27_s25 }
   0xa   :  { %p473_p3 = scmp.ne.s32.totalorder %s27_s25, %s472_s10  ;;  %p478_p5 = scmp.lt.s32.totalorder %s472_s10, %s472_s10 }
   0xc   :  { %p479_p6 = por %p478_p5, %p477_p4 }
   0xe   :  { %p480_p7 = pnand %p479_p6, %p473_p3 }
  0x10   :  { %483 = shalt.err (!%p480_p7)
}
  0x11   :  { %s535_s11 = smov 128   ;;  %s536_s12 = smov 8  }
  0x12   :  { %32 = dma.hbm_to_vmem [thread:$0]  %s654_s3, 2048, %s27_s25, [#allocation3], %s535_s11, %s535_s11, %s536_s12  }
  0x13   :  { %s537_s15 = smov [#allocation5]   ;;  %s484_s19 = scalar_lea.hbm %s656_s5, 2048 }
  0x14   :  { %s40_s16 = sshll.u32 %s537_s15, 4  ;;  %p485_p8 = scmp.ne.s32.totalorder %s656_s5, %s484_s19  ;;  %s41_s16 = int_to_ptr.vmem [resolvable:$true] %s40_s16 }
  0x15   :  { %p488_p9 = scmp.lt.u32.totalorder %s484_s19, %s656_s5 }
  0x17   :  { %p490_p10 = pnand %p488_p9, %p485_p8 }
  0x19   :  { %493 = shalt.err (!%p490_p10)
}
  0x1a   :  { %s494_s24 = scalar_lea.vmem %s41_s16, 2048  ;;  %p499_p12 = scmp.lt.s32.totalorder %s41_s16, %s41_s16 }
  0x1b   :  { %p495_p11 = scmp.ne.s32.totalorder %s41_s16, %s494_s24  ;;  %p500_p13 = scmp.lt.s32.totalorder %s494_s24, %s494_s24 }
  0x1d   :  { %p501_p0 = por %p500_p13, %p499_p12 }
  0x1f   :  { %p502_p1 = pnand %p501_p0, %p495_p11 }
  0x21   :  { %505 = shalt.err (!%p502_p1)
}
  0x22   :  { %46 = dma.hbm_to_vmem [thread:$0]  %s656_s5, 2048, %s41_s16, [#allocation6], %s535_s11, %s535_s11, %s536_s12  }
  0x23   :  { %528 = dma.done.wait [#allocation3], 2048  }
  0x24   :  { %529 = vsyncadd [#allocation3], 4294965248 }
  0x25   :  { %530 = dma.done.wait [#allocation6], 2048  }
  0x26   :  { %531 = vsyncadd [#allocation6], 4294965248  ;;  %v538_v0 = vmov 0   ;;  %v539_v1 = vmov 0.0|0.0   ;;  %v55_v2 = vld [vmem:[%s651_s0] sm:$0xff]  ;;  %v87_v4 = vld [vmem:[#allocation2 + $0x8] sm:$0xff]  ;;  %v63_v44 = vlaneseq }
  0x27   :  { %456 = vset.pattern.permute.xlu0 %v538_v0  ;;  %398 = vmatprep.subr.bf16.mxu0 %v539_v1  ;;  %v86_v3 = vld [vmem:[#allocation2] sm:$0xff]  ;;  %v88_v6 = vld [vmem:[#allocation2 + $0x10] sm:$0xff]  ;;  %v89_v7 = vld [vmem:[#allocation2 + $0x18] sm:$0xff]  ;;  %v540_v11 = vmov 1   ;;  %vm541_vm0 = vmmov 0   ;;  %v542_v18 = vmov 0.0  }
  0x28   :  { %422 = vmatprep.subr.bf16.mxu1 %v539_v1  ;;  %60 = vperm.xlu0 %456, %v55_v2   ;;  %v399_v5 = vpack.c.bf16 %v87_v4, %v86_v3  ;;  %v402_v8 = vpack.c.bf16 %v89_v7, %v88_v6  ;;  %v90_v9 = vld [vmem:[#allocation2 + $0x20] sm:$0xff]  ;;  %v91_v10 = vld [vmem:[#allocation2 + $0x28] sm:$0xff]  ;;  %v92_v13 = vld [vmem:[#allocation2 + $0x30] sm:$0xff]  ;;  %v64_v45 = vshrl.u32 %v63_v44, 7  ;;  %s543_s9 = smov [#allocation7]   ;;  %vm273_vm1 = vcmask 261120  }
  0x29   :  { %v405_v12 = vpack.c.bf16 %v91_v10, %v90_v9  ;;  %v93_v14 = vld [vmem:[#allocation2 + $0x38] sm:$0xff]  ;;  %v94_v16 = vld [vmem:[#allocation2 + $0x40] sm:$0xff]  ;;  %v95_v17 = vld [vmem:[#allocation2 + $0x48] sm:$0xff]  ;;  %360 = vmatprep.mubr.msk.f32.mxu0 %vm541_vm0, %v542_v18  ;;  %395 = vmatprep.mubr.msk.f32.mxu1 %vm541_vm0, %v542_v18  ;;  %s281_s10 = sshll.u32 %s543_s9, 4  ;;  %s282_s10 = int_to_ptr.vmem [resolvable:$true] %s281_s10 }
  0x2a   :  { %400 = vmatpush3.bf16.msra.mxu0 %v399_v5  ;;  %v408_v15 = vpack.c.bf16 %v93_v14, %v92_v13  ;;  %v411_v19 = vpack.c.bf16 %v95_v17, %v94_v16  ;;  %v96_v20 = vld [vmem:[#allocation2 + $0x50] sm:$0xff]  ;;  %v97_v21 = vld [vmem:[#allocation2 + $0x58] sm:$0xff]  ;;  %v98_v23 = vld [vmem:[#allocation2 + $0x60] sm:$0xff]  ;;  %v65_v46 = vsub.s32 0, %v64_v45  ;;  %v74_v47 = vsub.s32 1, %v64_v45  ;;  %s506_s11 = scalar_lea.vmem %s282_s10, 128  ;;  %p511_p3 = scmp.lt.s32.totalorder %s282_s10, %s282_s10 }
  0x2b   :  { %401 = vmatprep.subr.bf16.mxu0 %v539_v1  ;;  %v414_v22 = vpack.c.bf16 %v97_v21, %v96_v20  ;;  %v99_v24 = vld [vmem:[#allocation2 + $0x68] sm:$0xff]  ;;  %v180_v26 = vld [vmem:[#allocation5] sm:$0xff]  ;;  %v182_v28 = vld [vmem:[#allocation5 + $0x10] sm:$0xff]  ;;  %p507_p2 = scmp.ne.s32.totalorder %s282_s10, %s506_s11  ;;  %p512_p4 = scmp.lt.s32.totalorder %s506_s11, %s506_s11 }
  0x2c   :  { %457 = vset.pattern.permute.xlu0 %v540_v11  ;;  %v417_v25 = vpack.c.bf16 %v99_v24, %v98_v23  ;;  %v181_v27 = vld [vmem:[#allocation5 + $0x8] sm:$0xff]  ;;  %v100_v29 = vld [vmem:[#allocation2 + $0x70] sm:$0xff]  ;;  %v101_v30 = vld [vmem:[#allocation2 + $0x78] sm:$0xff] }
  0x2d   :  { %69 = vperm.xlu0 %457, %v55_v2   ;;  %v423_v31 = vpack.c.bf16 %v181_v27, %v180_v26  ;;  %v183_v32 = vld [vmem:[#allocation5 + $0x18] sm:$0xff]  ;;  %v420_v34 = vpack.c.bf16 %v101_v30, %v100_v29  ;;  %v184_v35 = vld [vmem:[#allocation5 + $0x20] sm:$0xff]  ;;  %v185_v36 = vld [vmem:[#allocation5 + $0x28] sm:$0xff]  ;;  %p513_p5 = por %p512_p4, %p511_p3 }
  0x2e   :  { %403 = vmatpush3.bf16.msra.mxu0 %v402_v8  ;;  %v426_v33 = vpack.c.bf16 %v183_v32, %v182_v28  ;;  %v429_v37 = vpack.c.bf16 %v185_v36, %v184_v35  ;;  %v186_v38 = vld [vmem:[#allocation5 + $0x30] sm:$0xff]  ;;  %v187_v39 = vld [vmem:[#allocation5 + $0x38] sm:$0xff]  ;;  %v188_v41 = vld [vmem:[#allocation5 + $0x40] sm:$0xff] }
  0x2f   :  { %404 = vmatprep.subr.bf16.mxu0 %v539_v1  ;;  %424 = vmatpush3.bf16.msra.mxu1 %v423_v31  ;;  %v432_v40 = vpack.c.bf16 %v187_v39, %v186_v38  ;;  %v189_v42 = vld [vmem:[#allocation5 + $0x48] sm:$0xff]  ;;  %v56_v48 = vld [vmem:[%s652_s1] sm:$0x3]  ;;  %v190_v59 = vld [vmem:[#allocation5 + $0x50] sm:$0xff]  ;;  %p514_p6 = pnand %p513_p5, %p507_p2 }
  0x30   :  { %425 = vmatprep.subr.bf16.mxu1 %v539_v1  ;;  %v435_v43 = vpack.c.bf16 %v189_v42, %v188_v41  ;;  %v66_v50 = vrot.slane %v56_v48, %v65_v46  ;;  %v75_v51 = vrot.slane %v56_v48, %v74_v47  ;;  %v291_v55 = vld [vmem:[%s653_s2] ss:$0 sm:$0xff]  ;;  %v191_v60 = vld [vmem:[#allocation5 + $0x58] sm:$0xff]  ;;  %v193_v63 = vld [vmem:[#allocation5 + $0x68] sm:$0xff] }
  0x31   :  { %v438_v61 = vpack.c.bf16 %v191_v60, %v190_v59  ;;  %v192_v62 = vld [vmem:[#allocation5 + $0x60] sm:$0xff]  ;;  %v194_v2 = vld [vmem:[#allocation5 + $0x70] sm:$0xff]  ;;  %v195_v3 = vld [vmem:[#allocation5 + $0x78] sm:$0xff] }
  0x32   :  { %406 = vmatpush3.bf16.msra.mxu0 %v405_v12  ;;  %v441_v0 = vpack.c.bf16 %v193_v63, %v192_v62  ;;  %v444_v4 = vpack.c.bf16 %v195_v3, %v194_v2  ;;  %v292_v5 = vld [vmem:[%s655_s4] ss:$0 sm:$0xff] }
  0x33   :  { %407 = vmatprep.subr.bf16.mxu0 %v539_v1  ;;  %427 = vmatpush3.bf16.msra.mxu1 %v426_v33  ;;  %v293_v10 = vld [vmem:[%s657_s6] ss:$0 sm:$0xff] }
  0x34   :  { %428 = vmatprep.subr.bf16.mxu1 %v539_v1 }
  0x36   :  { %409 = vmatpush3.bf16.msra.mxu0 %v408_v15 }
  0x37   :  { %410 = vmatprep.subr.bf16.mxu0 %v539_v1  ;;  %430 = vmatpush3.bf16.msra.mxu1 %v429_v37 }
  0x38   :  { %431 = vmatprep.subr.bf16.mxu1 %v539_v1 }
  0x3a   :  { %412 = vmatpush3.bf16.msra.mxu0 %v411_v19 }
  0x3b   :  { %413 = vmatprep.subr.bf16.mxu0 %v539_v1  ;;  %433 = vmatpush3.bf16.msra.mxu1 %v432_v40 }
  0x3c   :  { %434 = vmatprep.subr.bf16.mxu1 %v539_v1 }
  0x3e   :  { %415 = vmatpush3.bf16.msra.mxu0 %v414_v22 }
  0x3f   :  { %416 = vmatprep.subr.bf16.mxu0 %v539_v1  ;;  %436 = vmatpush3.bf16.msra.mxu1 %v435_v43 }
  0x40   :  { %437 = vmatprep.subr.bf16.mxu1 %v539_v1 }
  0x42   :  { %418 = vmatpush3.bf16.msra.mxu0 %v417_v25 }
  0x43   :  { %419 = vmatprep.subr.bf16.mxu0 %v539_v1  ;;  %439 = vmatpush3.bf16.msra.mxu1 %v438_v61 }
  0x44   :  { %440 = vmatprep.subr.bf16.mxu1 %v539_v1 }
  0x46   :  { %421 = vmatpush3.bf16.msra.mxu0 %v420_v34 }
  0x47   :  { %442 = vmatpush3.bf16.msra.mxu1 %v441_v0 }
  0x48   :  { %443 = vmatprep.subr.bf16.mxu1 %v539_v1 }
  0x4b   :  { %445 = vmatpush3.bf16.msra.mxu1 %v444_v4 }
  0xa7   :  { %v61_v49 = vpop.permute.xlu0 %60 }
  0xa8   :  { %v67_v53 = vmul.f32 %v66_v50, %v61_v49 }
  0xac   :  { %v70_v52 = vpop.permute.xlu0 %69 }
  0xad   :  { %v76_v54 = vmul.f32 %v75_v51, %v70_v52 }
  0xaf   :  { %v77_v56 = vadd.f32 %v76_v54, %v67_v53 }
  0xb1   :  { %v84_v57 = vadd.f32 %v291_v55, %v77_v56 }
  0xb3   :  { %458 = vtanh.f32 %v84_v57 }
  0xbd   :  { %v459_v58 = vpop.eup %458 }
  0xbe   :  { %361 = vmatmul.mubr.f32.vlgmr.msra.gmra.mrb[0].mxu0 %v459_v58 }
 0x191   :  { %v175_v6 = vpop.f32.mrb[0].mxu0 }
 0x192   :  { %v176_v7 = vadd.f32 %v292_v5, %v175_v6  ;;  %v362_v8 = vpop.f32.mrb[1].mxu0 }
 0x194   :  { %460 = vtanh.f32 %v176_v7 }
 0x19e   :  { %v461_v9 = vpop.eup %460 }
 0x19f   :  { %396 = vmatmul.mubr.f32.vlgmr.msra.gmra.mrb[0].mxu1 %v461_v9 }
 0x272   :  { %v269_v11 = vpop.f32.mrb[0].mxu1 }
 0x273   :  { %v270_v1 = vadd.f32 %v293_v10, %v269_v11  ;;  %v397_v12 = vpop.f32.mrb[1].mxu1 }
 0x275   :  { %274 = vst.msk [vmem:[#allocation7] sm:$0xff] %vm273_vm1, %v270_v1 }
 0x276   :  { %517 = shalt.err (!%p514_p6)
}
 0x277   :  { %s518_s13 = scalar_lea.hbm %s658_s7, 128 }
 0x278   :  { %p519_p7 = scmp.ne.s32.totalorder %s658_s7, %s518_s13  ;;  %p522_p8 = scmp.lt.u32.totalorder %s518_s13, %s658_s7 }
 0x27a   :  { %p524_p9 = pnand %p522_p8, %p519_p7 }
 0x27c   :  { %527 = shalt.err (!%p524_p9)
}
 0x27d   :  { %284 = dma.vmem_to_hbm [thread:$0]  %s282_s10, 128, %s658_s7, [#allocation4]  }
 0x27e   :  { %532 = dma.done.wait [#allocation4], 128  }
 0x27f   :  { %533 = vsyncadd [#allocation4], 4294967168 }
 0x280   :  { %288 = vsyncpa [#allocation3], 1 }
 0x281   :  { %289 = vsyncpa [#allocation6], 1 }
 0x282   :  { %290 = vsyncpa [#allocation4], 1 }

</bundles_post_ra>
